<compile_context>
chip_gen: v6e
topology: v6e:2x2x1
jax: 0.10.0
libtpu: 0.0.40
codegen_flags: <defaults>
</compile_context>

<pallas_src>
import jax
import jax.numpy as jnp
from jax.experimental import pallas as pl
from jax.experimental.pallas import tpu as pltpu

BN_EPS = 1e-5


def _round_up(x, m):
    return (x + m - 1) // m * m


def _vmem_capacity_bytes():
    try:
        return int(pltpu.get_tpu_info().vmem_capacity_bytes)
    except Exception:
        return 64 * 1024 * 1024          # conservative fallback (v7x-sized)


def _vmem_limit(working_set_bytes, vmem_cap):
    # 2x headroom over the estimated working set, floor 32 MiB, capped at the
    # generation-aware budget (~85% of physical VMEM).
    return int(min(max(2 * working_set_bytes, 32 * 1024 * 1024), vmem_cap))


def _pick_tile_m(m, tmax, align):
    """Token-axis tile: prefer one that divides m exactly (no padding / epilogue)."""
    if m <= tmax:
        return _round_up(m, align)
    t = tmax - tmax % align
    while t >= align:
        if m % t == 0:
            return t
        t -= align
    return tmax - tmax % align


# --------------------------------------------------------------------------- #
# Kernels
# --------------------------------------------------------------------------- #
def fc_matmul_stats_kernel(x_ref, w_ref, h_ref, sum_ref, ssq_ref):
    """Pass 1: h = x @ Wt per (M, N) tile; emit per-tile channel sum / sumsq.

    No bias add (BatchNorm cancels it exactly).  h is stored in the output dtype;
    the statistics are taken from the f32 accumulator before any downcast.
    """
    h = jnp.dot(x_ref[...], w_ref[...], preferred_element_type=jnp.float32)
    h_ref[...] = h.astype(h_ref.dtype)
    sum_ref[0] = jnp.sum(h, axis=0, keepdims=True)      # (1, tn) f32 partial
    ssq_ref[0] = jnp.sum(h * h, axis=0, keepdims=True)  # (1, tn) f32 partial


def fc_bn_prelu_kernel(alpha_ref, h_ref, scale_ref, shift_ref, o_ref):
    """Pass 2: folded BatchNorm (per-channel scale/shift) + PReLU (scalar alpha)."""
    y = h_ref[...].astype(jnp.float32) * scale_ref[...] + shift_ref[...]
    alpha = alpha_ref[0]
    o_ref[...] = jnp.where(y >= 0, y, alpha * y).astype(o_ref.dtype)


# --------------------------------------------------------------------------- #
# Parameter preparation (do ONCE, reuse across forward calls)
# --------------------------------------------------------------------------- #
def prepare_fc_params(W, b, gamma, beta, alpha, *, compute_dtype=jnp.bfloat16):
    """Pad (odim -> x128) and pre-transpose the weight once; store & reuse.

    compute_dtype defaults to bf16: native MXU rate on v5e/v6e/v7x and half the
    x/W DMA bytes; the matmul still accumulates in f32 in-kernel.  Pass
    jnp.float32 for a bit-exacter (slower) path.  `b` is accepted for API parity
    but unused on the kernel path (BatchNorm cancels the Linear bias exactly).
    """
    del b
    odim, idim = W.shape
    odimP = _round_up(odim, 128)
    wt = jnp.zeros((idim, odimP), compute_dtype).at[:, :odim].set(
        W.T.astype(compute_dtype))
    g_p = jnp.zeros((1, odimP), jnp.float32).at[0, :odim].set(
        gamma.astype(jnp.float32))
    be_p = jnp.zeros((1, odimP), jnp.float32).at[0, :odim].set(
        beta.astype(jnp.float32))
    a_p = jnp.asarray([alpha], dtype=jnp.float32)
    return dict(wt=wt, gamma=g_p, beta=be_p, alpha=a_p,
                idim=idim, odim=odim, odimP=odimP)


# --------------------------------------------------------------------------- #
# Forward
# --------------------------------------------------------------------------- #
def fc_forward(x, params, *, tm_max=512, tm2_max=1024, tn_max=1024):
    """x: (B, S, idim).  Returns (B, S, odim) in x.dtype."""
    B, S, idim = x.shape
    assert idim == params["idim"], (idim, params["idim"])
    odim, odimP = params["odim"], params["odimP"]
    wt, gamma, beta, alpha = (params["wt"], params["gamma"],
                              params["beta"], params["alpha"])

    out_dtype = x.dtype
    h_dtype = out_dtype                    # h round-trips HBM: keep it in out dtype
    xb = jnp.dtype(wt.dtype).itemsize
    wb = xb
    hb = jnp.dtype(h_dtype).itemsize
    ob = jnp.dtype(out_dtype).itemsize
    vmem_cap = int(0.85 * _vmem_capacity_bytes())

    # ---- M (token) tiling: only the token axis is padded; K (idim) stays as-is ----
    M = B * S
    align = 16 if min(xb, hb, ob) < 4 else 8
    tm = _pick_tile_m(M, tm_max, align)
    MP = _round_up(M, tm)
    n_pad = MP - M
    n_m = MP // tm

    # ---- N (odim) tiling: only if the resident weight slab would blow VMEM ----
    max_w_bytes = int(0.4 * vmem_cap)
    if idim * odimP * wb <= max_w_bytes:
        tn, w_bufs = odimP, 1              # whole weight resident, single-buffered
    else:
        tn = (max_w_bytes // (2 * idim * wb)) // 128 * 128
        tn = int(min(max(tn, 128), tn_max, odimP))
        while odimP % tn:
            tn -= 128
        w_bufs = 2                         # weight slabs stream -> double-buffered
    n_n = odimP // tn

    # Single fused cast(+pad) copy of x; padded rows are zero and (with no bias)
    # contribute exactly 0 to the statistics — no analytic correction needed.
    x2 = x.reshape(M, idim)
    if n_pad:
        x2 = jnp.zeros((MP, idim), wt.dtype).at[:M, :].set(x2.astype(wt.dtype))
    elif x2.dtype != wt.dtype:
        x2 = x2.astype(wt.dtype)

    # ----------------------------- pass 1: matmul + stats -----------------------------
    if w_bufs == 1:
        w_spec = pl.BlockSpec((idim, tn), lambda i, j: (0, j),
                              pipeline_mode=pl.Buffered(1))
    else:
        w_spec = pl.BlockSpec((idim, tn), lambda i, j: (0, j))

    est1 = (2 * tm * idim * xb + w_bufs * idim * tn * wb
            + 2 * tm * tn * hb + tm * tn * 4 + 8 * tn * 4)
    cost1 = pl.CostEstimate(
        flops=2 * MP * idim * odimP + 3 * MP * odimP,
        transcendentals=0,
        bytes_accessed=(MP * idim * xb + n_m * idim * odimP * wb
                        + MP * odimP * hb + 2 * n_m * odimP * 4))

    h, psum, pssq = pl.pallas_call(
        fc_matmul_stats_kernel,
        out_shape=(jax.ShapeDtypeStruct((MP, odimP), h_dtype),
                   jax.ShapeDtypeStruct((n_m, 1, odimP), jnp.float32),
                   jax.ShapeDtypeStruct((n_m, 1, odimP), jnp.float32)),
        grid_spec=pltpu.PrefetchScalarGridSpec(
            num_scalar_prefetch=0,
            grid=(n_m, n_n),
            in_specs=[
                pl.BlockSpec((tm, idim), lambda i, j: (i, 0)),
                w_spec,
            ],
            out_specs=[
                pl.BlockSpec((tm, tn), lambda i, j: (i, j)),
                pl.BlockSpec((1, 1, tn), lambda i, j: (i, 0, j)),
                pl.BlockSpec((1, 1, tn), lambda i, j: (i, 0, j)),
            ]),
        compiler_params=pltpu.CompilerParams(
            dimension_semantics=("parallel", "arbitrary"),
            vmem_limit_bytes=_vmem_limit(est1, vmem_cap)),
        cost_estimate=cost1,
    )(x2, wt)

    # ---- fold BatchNorm into a per-channel scale/shift (tiny f32 ops) ----
    s1 = jnp.sum(psum, axis=0)                     # (1, odimP)
    s2 = jnp.sum(pssq, axis=0)
    mean = s1 / M
    var = jnp.maximum(s2 / M - mean * mean, 0.0)
    scale = gamma * jax.lax.rsqrt(var + BN_EPS)
    shift = beta - mean * scale

    # --------------------------- pass 2: scale/shift + PReLU ---------------------------
    # Pure HBM-bound elementwise work: use as large an M tile as VMEM allows.
    row_bytes = 2 * odimP * (hb + ob)
    k = max(1, min(tm2_max, int(0.5 * vmem_cap) // max(row_bytes, 1)) // tm)
    k = min(k, n_m)
    while n_m % k:
        k -= 1
    tm2 = tm * k
    # TODO(synk): also tile odimP in pass 2 for extremely wide layers.

    est2 = 2 * tm2 * odimP * (hb + ob) + 4 * odimP * 4
    cost2 = pl.CostEstimate(
        flops=4 * MP * odimP,
        transcendentals=0,
        bytes_accessed=MP * odimP * (hb + ob) + 2 * odimP * 4)

    out = pl.pallas_call(
        fc_bn_prelu_kernel,
        out_shape=jax.ShapeDtypeStruct((MP, odimP), out_dtype),
        grid_spec=pltpu.PrefetchScalarGridSpec(
            num_scalar_prefetch=0,
            grid=(MP // tm2,),
            in_specs=[
                pl.BlockSpec(memory_space=pltpu.MemorySpace.SMEM),   # alpha scalar
                pl.BlockSpec((tm2, odimP), lambda i: (i, 0)),
                pl.BlockSpec((1, odimP), lambda i: (0, 0),
                             pipeline_mode=pl.Buffered(1)),
                pl.BlockSpec((1, odimP), lambda i: (0, 0),
                             pipeline_mode=pl.Buffered(1)),
            ],
            out_specs=pl.BlockSpec((tm2, odimP), lambda i: (i, 0))),
        compiler_params=pltpu.CompilerParams(
            dimension_semantics=("parallel",),      # megacore splits the token range
            vmem_limit_bytes=_vmem_limit(est2, vmem_cap)),
        cost_estimate=cost2,
    )(alpha, h, scale, shift)

    if MP == M and odimP == odim:                   # no padding -> no epilogue copy
        return out.reshape(B, S, odim)
    return out[:M, :odim].reshape(B, S, odim)


# --------------------------------------------------------------------------- #
# Pure-JAX reference mirroring the PyTorch forward
# --------------------------------------------------------------------------- #
def fc_reference(x, W, b, gamma, beta, alpha):
    h = jnp.einsum("bsi,oi->bso", x, W) + b
    mean = jnp.mean(h, axis=(0, 1), keepdims=True)
    var = jnp.mean((h - mean) ** 2, axis=(0, 1), keepdims=True)
    y = (h - mean) / jnp.sqrt(var + BN_EPS) * gamma + beta
    return jnp.where(y >= 0, y, alpha * y)


if __name__ == "__main__":
    # Small, deterministic setup consistent with FC(idim=32, odim=16)
    B, S, idim, odim = 2, 8, 32, 16
    key = jax.random.PRNGKey(0)
    kx, kw, kb, kg, kbe = jax.random.split(key, 5)

    x = jax.random.normal(kx, (B, S, idim), dtype=jnp.float32)

    # nn.Linear default-style init: U(-1/sqrt(idim), 1/sqrt(idim))
    bound = 1.0 / (idim ** 0.5)
    W = jax.random.uniform(kw, (odim, idim), jnp.float32, -bound, bound)
    b = jax.random.uniform(kb, (odim,), jnp.float32, -bound, bound)

    # BatchNorm1d affine params (perturbed so the affine path is exercised).
    gamma = 1.0 + 0.1 * jax.random.normal(kg, (odim,), dtype=jnp.float32)
    beta = 0.1 * jax.random.normal(kbe, (odim,), dtype=jnp.float32)

    alpha = 0.25  # PReLU init

    ref = fc_reference(x, W, b, gamma, beta, alpha)

    # f32 compute path: tight correctness check.
    params_f32 = prepare_fc_params(W, b, gamma, beta, alpha,
                                   compute_dtype=jnp.float32)
    out_f32 = jax.block_until_ready(fc_forward(x, params_f32))
    assert out_f32.shape == (B, S, odim)
    err_f32 = float(jnp.max(jnp.abs(out_f32 - ref)))
    assert err_f32 < 1e-4, err_f32

    # Default bf16 MXU path: dtype-aware (looser) tolerance.
    params_bf16 = prepare_fc_params(W, b, gamma, beta, alpha)   # bf16 default
    out_bf16 = jax.block_until_ready(fc_forward(x, params_bf16))
    assert out_bf16.shape == (B, S, odim)
    err_bf16 = float(jnp.max(jnp.abs(out_bf16 - ref)))
    assert err_bf16 < 6e-2, err_bf16

    print("KERNEL_OK")
</pallas_src>

<mosaic_0001>
module attributes {stable_mosaic.version = 11 : i64} {
  func.func @fc_matmul_stats_kernel(%arg0: i32, %arg1: i32, %arg2: memref<16x32xf32, #tpu.memory_space<vmem>>, %arg3: memref<32x128xf32, #tpu.memory_space<vmem>>, %arg4: memref<16x128xf32, #tpu.memory_space<vmem>>, %arg5: memref<1x1x128xf32, #tpu.memory_space<vmem>>, %arg6: memref<1x1x128xf32, #tpu.memory_space<vmem>>) attributes {dimension_semantics = [#tpu.dimension_semantics<parallel>, #tpu.dimension_semantics<arbitrary>], iteration_bounds = array<i64: 1, 1>, scalar_prefetch = 0 : i64, scratch_operands = 0 : i64, tpu.core_type = #tpu.core_type<tc>, window_params = [{transform_indices = @transform_0, window_bounds = array<i64: 16, 32>}, {pipeline_mode = #tpu.pipeline_mode<synchronous>, transform_indices = @transform_1, window_bounds = array<i64: 32, 128>}, {transform_indices = @transform_2, window_bounds = array<i64: 16, 128>}, {transform_indices = @transform_3, window_bounds = array<i64: 1, 1, 128>}, {transform_indices = @transform_4, window_bounds = array<i64: 1, 1, 128>}]} {
    %c0 = arith.constant 0 : index
    %c0_0 = arith.constant 0 : index
    %0 = vector.load %arg2[%c0, %c0_0] : memref<16x32xf32, #tpu.memory_space<vmem>>, vector<16x32xf32>
    %c0_1 = arith.constant 0 : index
    %c0_2 = arith.constant 0 : index
    %1 = vector.load %arg3[%c0_1, %c0_2] : memref<32x128xf32, #tpu.memory_space<vmem>>, vector<32x128xf32>
    %cst = arith.constant dense<0.000000e+00> : vector<16x128xf32>
    %2 = tpu.matmul %0, %1, %cst {dimension_numbers = #tpu.dot_dimension_numbers<[1], [0], [0], [1], [0, 0, 1, 1], [], []>} : vector<16x32xf32>, vector<32x128xf32>, vector<16x128xf32> -> vector<16x128xf32>
    %c0_3 = arith.constant 0 : index
    %c0_4 = arith.constant 0 : index
    %3 = vector.load %arg4[%c0_3, %c0_4] : memref<16x128xf32, #tpu.memory_space<vmem>>, vector<16x128xf32>
    tpu.vector_store %arg4[%c0_3, %c0_4], %2 {strides = array<i32>} : memref<16x128xf32, #tpu.memory_space<vmem>>, vector<16x128xf32>,
    %cst_5 = arith.constant dense<0.000000e+00> : vector<128xf32>
    %4 = vector.multi_reduction <add>, %2, %cst_5 [0] : vector<16x128xf32> to vector<128xf32>
    %5 = vector.shape_cast %4 : vector<128xf32> to vector<1x128xf32>
    %c0_6 = arith.constant 0 : index
    %c0_7 = arith.constant 0 : index
    %c0_8 = arith.constant 0 : index
    %6 = vector.load %arg5[%c0_6, %c0_7, %c0_8] : memref<1x1x128xf32, #tpu.memory_space<vmem>>, vector<1x1x128xf32>
    %7 = vector.shape_cast %6 : vector<1x1x128xf32> to vector<1x128xf32>
    %8 = vector.shape_cast %5 : vector<1x128xf32> to vector<1x1x128xf32>
    tpu.vector_store %arg5[%c0_6, %c0_7, %c0_8], %8 {strides = array<i32>} : memref<1x1x128xf32, #tpu.memory_space<vmem>>, vector<1x1x128xf32>,
    %9 = arith.mulf %2, %2 : vector<16x128xf32>
    %cst_9 = arith.constant dense<0.000000e+00> : vector<128xf32>
    %10 = vector.multi_reduction <add>, %9, %cst_9 [0] : vector<16x128xf32> to vector<128xf32>
    %11 = vector.shape_cast %10 : vector<128xf32> to vector<1x128xf32>
    %c0_10 = arith.constant 0 : index
    %c0_11 = arith.constant 0 : index
    %c0_12 = arith.constant 0 : index
    %12 = vector.load %arg6[%c0_10, %c0_11, %c0_12] : memref<1x1x128xf32, #tpu.memory_space<vmem>>, vector<1x1x128xf32>
    %13 = vector.shape_cast %12 : vector<1x1x128xf32> to vector<1x128xf32>
    %14 = vector.shape_cast %11 : vector<1x128xf32> to vector<1x1x128xf32>
    tpu.vector_store %arg6[%c0_10, %c0_11, %c0_12], %14 {strides = array<i32>} : memref<1x1x128xf32, #tpu.memory_space<vmem>>, vector<1x1x128xf32>,
    return
  }
  func.func @transform_0(%arg0: i32, %arg1: i32) -> (i32, i32) {
    %c0_i32 = arith.constant 0 : i32
    %c0_i32_0 = arith.constant 0 : i32
    return %arg0, %c0_i32 : i32, i32
  }
  func.func @transform_1(%arg0: i32, %arg1: i32) -> (i32, i32) {
    %c0_i32 = arith.constant 0 : i32
    %c0_i32_0 = arith.constant 0 : i32
    return %c0_i32, %arg1 : i32, i32
  }
  func.func @transform_2(%arg0: i32, %arg1: i32) -> (i32, i32) {
    %c0_i32 = arith.constant 0 : i32
    return %arg0, %arg1 : i32, i32
  }
  func.func @transform_3(%arg0: i32, %arg1: i32) -> (i32, i32, i32) {
    %c0_i32 = arith.constant 0 : i32
    %c0_i32_0 = arith.constant 0 : i32
    return %arg0, %c0_i32, %arg1 : i32, i32, i32
  }
  func.func @transform_4(%arg0: i32, %arg1: i32) -> (i32, i32, i32) {
    %c0_i32 = arith.constant 0 : i32
    %c0_i32_0 = arith.constant 0 : i32
    return %arg0, %c0_i32, %arg1 : i32, i32, i32
  }
}

</mosaic_0001>

<bundles_post_ra>
// kernel: tpu_custom_call.1
= control target key start
LH: loop header
LB: loop body
LE: loop exit
PB: predicated region body
PF: predicated region fallthrough
CT: control target
= control target key end

     0   :  { %10 = vsyncpa [#allocation3], 0  ;;  %s389_s0 = inlined_call_operand.hbm [shape: f32[16,32], index: 0, kind: input, shape index: {}]   ;;  %s390_s1 = inlined_call_operand.hbm [shape: f32[32,128], index: 1, kind: input, shape index: {}]   ;;  %s391_s2 = inlined_call_operand.hbm [shape: f32[16,128], index: 2, kind: output, shape index: {0}]   ;;  %s392_s3 = inlined_call_operand.hbm [shape: f32[1,1,128], index: 3, kind: output, shape index: {1}]   ;;  %s393_s4 = inlined_call_operand.hbm [shape: f32[1,1,128], index: 4, kind: output, shape index: {2}]  }
   0x1   :  { %11 = vsyncpa [#allocation6], 0 }
   0x2   :  { %12 = vsyncpa [#allocation4], 0 }
   0x3   :  { %13 = vsyncpa [#allocation9], 0  ;;  %s331_s15 = smov [#allocation2]  }
   0x4   :  { %s19_s16 = sshll.u32 %s331_s15, 4  ;;  %s20_s16 = int_to_ptr.vmem [resolvable:$true] %s19_s16 }
   0x5   :  { %s231_s17 = scalar_lea.vmem %s20_s16, 256  ;;  %p236_p1 = scmp.lt.s32.totalorder %s20_s16, %s20_s16 }
   0x6   :  { %p232_p0 = scmp.ne.s32.totalorder %s20_s16, %s231_s17  ;;  %p237_p2 = scmp.lt.s32.totalorder %s231_s17, %s231_s17 }
   0x8   :  { %p238_p3 = por %p237_p2, %p236_p1 }
   0xa   :  { %p239_p4 = pnand %p238_p3, %p232_p0 }
   0xc   :  { %242 = shalt.err (!%p239_p4)
}
   0xd   :  { %s332_s18 = smov 128   ;;  %s333_s19 = smov 8  }
   0xe   :  { %25 = dma.hbm_to_vmem [thread:$0]  %s389_s0, 256, %s20_s16, [#allocation3], %s332_s18, %s332_s18, %s333_s19  }
   0xf   :  { %s334_s22 = smov [#allocation5]  }
  0x10   :  { %s31_s23 = sshll.u32 %s334_s22, 4  ;;  %s32_s23 = int_to_ptr.vmem [resolvable:$true] %s31_s23 }
  0x11   :  { %s251_s24 = scalar_lea.vmem %s32_s23, 512  ;;  %p256_p6 = scmp.lt.s32.totalorder %s32_s23, %s32_s23 }
  0x12   :  { %p252_p5 = scmp.ne.s32.totalorder %s32_s23, %s251_s24  ;;  %p257_p7 = scmp.lt.s32.totalorder %s251_s24, %s251_s24 }
  0x14   :  { %p258_p8 = por %p257_p7, %p256_p6 }
  0x16   :  { %p259_p9 = pnand %p258_p8, %p252_p5 }
  0x18   :  { %262 = shalt.err (!%p259_p9)
}
  0x19   :  { %37 = dma.hbm_to_vmem [thread:$0]  %s390_s1, 512, %s32_s23, [#allocation6], %s332_s18, %s332_s18, %s333_s19  }
  0x1a   :  { %323 = dma.done.wait [#allocation3], 256  }
  0x1b   :  { %324 = vsyncadd [#allocation3], 4294967040 }
  0x1c   :  { %325 = dma.done.wait [#allocation6], 512  }
  0x1d   :  { %326 = vsyncadd [#allocation6], 4294966784  ;;  %vm50_vm0 = vcmask 261120   ;;  %v49_v0 = vld [vmem:[#allocation5 + $0x18] sm:$0xff]  ;;  %v48_v1 = vld [vmem:[#allocation5 + $0x10] sm:$0xff]  ;;  %s335_s0 = smov [#allocation7]  }
  0x1e   :  { %205 = vmatprep.subr.mxu0 %v49_v0  ;;  %v44_v2 = vld [vmem:[#allocation2] sm:$0xff]  ;;  %v47_v3 = vld [vmem:[#allocation5 + $0x8] sm:$0xff]  ;;  %v46_v4 = vld [vmem:[#allocation5] sm:$0xff]  ;;  %s157_s1 = sshll.u32 %s335_s0, 4  ;;  %s158_s1 = int_to_ptr.vmem [resolvable:$true] %s157_s1 }
  0x1f   :  { %206 = vmatpush3.msra.mxu0 %v49_v0  ;;  %213 = vmatprep.mubr.msk.f32.mxu0 %vm50_vm0, %v44_v2  ;;  %v45_v5 = vld [vmem:[#allocation2 + $0x8] sm:$0xff]  ;;  %s263_s27 = scalar_lea.vmem %s158_s1, 256  ;;  %p268_p11 = scmp.lt.s32.totalorder %s158_s1, %s158_s1 }
  0x20   :  { %207 = vmatprep.subr.mxu0 %v48_v1  ;;  %p264_p10 = scmp.ne.s32.totalorder %s158_s1, %s263_s27  ;;  %p269_p12 = scmp.lt.s32.totalorder %s263_s27, %s263_s27 }
  0x21   :  { %208 = vmatpush3.msra.mxu0 %v48_v1 }
  0x22   :  { %209 = vmatprep.subr.mxu0 %v47_v3  ;;  %p270_p13 = por %p269_p12, %p268_p11 }
  0x23   :  { %210 = vmatpush3.msra.mxu0 %v47_v3 }
  0x24   :  { %211 = vmatprep.subr.mxu0 %v46_v4  ;;  %p271_p0 = pnand %p270_p13, %p264_p10 }
  0x25   :  { %212 = vmatpush3.msra.mxu0 %v46_v4 }
  0x26   :  { %214 = vmatmul.mubr.msk.f32.vlgmr.msra.gmra.mxu0 %vm50_vm0, %v45_v5 }
  0xe6   :  { %v215_v6 = vpop.f32.mrf.mxu0 }
  0xe7   :  { %133 = vst [vmem:[#allocation7 + $0x8] sm:$0xff] %v215_v6  ;;  %v143_v8 = vmul.f32 %v215_v6, %v215_v6 }
  0xe8   :  { %v123_v7 = vpop.f32.mrf.mxu0 }
  0xe9   :  { %132 = vst [vmem:[#allocation7] sm:$0xff] %v123_v7  ;;  %v134_v9 = vadd.f32 %v215_v6, %v123_v7  ;;  %v142_v10 = vmul.f32 %v123_v7, %v123_v7 }
  0xea   :  { %274 = shalt.err (!%p271_p0)
}
  0xeb   :  { %163 = dma.vmem_to_hbm [thread:$0]  %s158_s1, 256, %s391_s2, [#allocation4], %s332_s18, %s332_s18, %s333_s19   ;;  %v135_v11 = vrot.slane %v134_v9, 4  ;;  %v144_v12 = vadd.f32 %v143_v8, %v142_v10 }
  0xec   :  { %s336_s30 = smov [#allocation8]   ;;  %s337_s6 = smov [#allocation10]  }
  0xed   :  { %v136_v13 = vadd.f32 %v135_v11, %v134_v9  ;;  %v145_v14 = vrot.slane %v144_v12, 4  ;;  %s170_s5 = sshll.u32 %s336_s30, 4  ;;  %s180_s7 = sshll.u32 %s337_s6, 4  ;;  %s171_s5 = int_to_ptr.vmem [resolvable:$true] %s170_s5  ;;  %s181_s7 = int_to_ptr.vmem [resolvable:$true] %s180_s7 }
  0xee   :  { %s283_s2 = scalar_lea.vmem %s171_s5, 16  ;;  %s287_s8 = scalar_lea.vmem %s171_s5, 32 }
  0xef   :  { %v137_v15 = vrot.slane %v136_v13, 2  ;;  %v146_v16 = vadd.f32 %v145_v14, %v144_v12  ;;  %p284_p1 = scmp.ne.s32.totalorder %s171_s5, %s283_s2  ;;  %p288_p2 = scmp.lt.s32.totalorder %s171_s5, %s171_s5 }
  0xf0   :  { %p289_p3 = scmp.lt.s32.totalorder %s287_s8, %s283_s2 }
  0xf1   :  { %v147_v17 = vrot.slane %v146_v16, 2  ;;  %v138_v18 = vadd.f32 %v137_v15, %v136_v13 }
  0xf2   :  { %p290_p4 = por %p289_p3, %p288_p2 }
  0xf3   :  { %v139_v19 = vrot.slane %v138_v18, 1  ;;  %v148_v20 = vadd.f32 %v147_v17, %v146_v16 }
  0xf4   :  { %p291_p5 = pnand %p290_p4, %p284_p1 }
  0xf5   :  { %v140_v21 = vadd.f32 %v139_v19, %v138_v18  ;;  %v149_v22 = vrot.slane %v148_v20, 1 }
  0xf7   :  { %141 = vst [vmem:[#allocation8] sm:$0x1] %v140_v21  ;;  %v150_v23 = vadd.f32 %v149_v22, %v148_v20 }
  0xf8   :  { %294 = shalt.err (!%p291_p5)
}
  0xf9   :  { %173 = dma.vmem_to_hbm [thread:$0]  %s171_s5, 16, %s392_s3, [#allocation9]   ;;  %151 = vst [vmem:[#allocation10] sm:$0x1] %v150_v23 }
  0xfa   :  { %s303_s11 = scalar_lea.vmem %s181_s7, 16  ;;  %s307_s12 = scalar_lea.vmem %s181_s7, 32 }
  0xfb   :  { %p304_p6 = scmp.ne.s32.totalorder %s181_s7, %s303_s11  ;;  %p308_p7 = scmp.lt.s32.totalorder %s181_s7, %s181_s7 }
  0xfc   :  { %p309_p8 = scmp.lt.s32.totalorder %s307_s12, %s303_s11 }
  0xfe   :  { %p310_p9 = por %p309_p8, %p308_p7 }
 0x100   :  { %p311_p10 = pnand %p310_p9, %p304_p6 }
 0x102   :  { %314 = shalt.err (!%p311_p10)
}
 0x103   :  { %183 = dma.vmem_to_hbm [thread:$0]  %s181_s7, 16, %s393_s4, [#allocation9]  }
 0x104   :  { %327 = dma.done.wait [#allocation4], 256  }
 0x105   :  { %328 = vsyncadd [#allocation4], 4294967040 }
 0x106   :  { %329 = dma.done.wait [#allocation9], 32  }
 0x107   :  { %330 = vsyncadd [#allocation9], 4294967264 }
 0x108   :  { %193 = vsyncpa [#allocation3], 1 }
 0x109   :  { %194 = vsyncpa [#allocation6], 1 }
 0x10a   :  { %195 = vsyncpa [#allocation4], 1 }
 0x10b   :  { %196 = vsyncpa [#allocation9], 1 }

</bundles_post_ra>
